<compile_context>
chip_gen: v6e
topology: v6e:2x2x1
jax: 0.10.0
libtpu: 0.0.40
codegen_flags: <defaults>
</compile_context>

<pallas_src>
import functools

import jax
import jax.numpy as jnp
from jax.experimental import pallas as pl
from jax.experimental.pallas import tpu as pltpu

LANES = 128


# ----------------------------- Pallas kernel --------------------------------
def _fused_gcn2_kernel(a_ref, x_ref, w_ref, o_ref, *, f_in, hidden, f_out_pad):
    # a_ref : (N, N)              bf16 normalized adjacency (A_hat[dst, src])
    # x_ref : (N, F_in)           bf16 node features
    # w_ref : (rows_pad, lanes)   f32 packed weight slab:
    #           rows [0, F_in)              cols [0, H)        -> W1
    #           row  F_in                   cols [0, H)        -> b1
    #           rows [F_in+1, F_in+1+H)     cols [0, F_out_pad)-> W2 (zero padded)
    #           row  F_in+1+H               cols [0, F_out_pad)-> b2 (zero padded)
    # o_ref : (N, F_out_pad)      f32, lane-dense store
    a = a_ref[...]
    w = w_ref[...]  # tiny (~28 KiB) slab, load once, slice as values

    w1 = w[0:f_in, 0:hidden].astype(jnp.bfloat16)                            # (F_in, H)
    b1 = w[f_in:f_in + 1, 0:hidden]                                          # (1, H)  f32
    w2 = w[f_in + 1:f_in + 1 + hidden, 0:f_out_pad].astype(jnp.bfloat16)     # (H, F_out_pad)
    b2 = w[f_in + 1 + hidden:f_in + 2 + hidden, 0:f_out_pad]                 # (1, F_out_pad) f32

    # ----- layer 1: contract the narrow F_in dim against A first: (A @ X) @ W1
    ax = jnp.dot(a, x_ref[...], preferred_element_type=jnp.float32)          # (N, F_in) f32
    h = jnp.dot(ax.astype(jnp.bfloat16), w1,
                preferred_element_type=jnp.float32)                          # (N, H)    f32
    h = jnp.maximum(h + b1, 0.0)                                             # bias + ReLU in f32
    # F.dropout(p=0.3, training=False) == identity at inference time.

    # ----- layer 2: (A @ H) @ W2_pad  (keeps the N^2 contraction on the narrow H dim)
    ah = jnp.dot(a, h.astype(jnp.bfloat16), preferred_element_type=jnp.float32)  # (N, H) f32
    o_ref[...] = jnp.dot(ah.astype(jnp.bfloat16), w2,
                         preferred_element_type=jnp.float32) + b2


# --------------------- one-time parameter packing ----------------------------
def pack_params(params):
    """Pack W1/b1/W2/b2 into a single zero-padded f32 slab (done ONCE, not per forward)."""
    f_in, hidden = params["w1"].shape
    f_out = params["w2"].shape[1]
    f_out_pad = pl.cdiv(f_out, LANES) * LANES
    lanes = max(f_out_pad, pl.cdiv(hidden, LANES) * LANES)
    rows = f_in + hidden + 2
    rows_pad = pl.cdiv(rows, 8) * 8

    slab = jnp.zeros((rows_pad, lanes), jnp.float32)
    slab = slab.at[0:f_in, 0:hidden].set(params["w1"].astype(jnp.float32))
    slab = slab.at[f_in, 0:hidden].set(params["b1"].astype(jnp.float32))
    slab = slab.at[f_in + 1:f_in + 1 + hidden, 0:f_out].set(params["w2"].astype(jnp.float32))
    slab = slab.at[f_in + 1 + hidden, 0:f_out].set(params["b2"].astype(jnp.float32))

    dims = dict(f_in=f_in, hidden=hidden, f_out=f_out, f_out_pad=f_out_pad)
    return slab, dims


# ------------------------------ forward (jitted) -----------------------------
def _forward_impl(w_slab, x, edge_index, *, f_in, hidden, f_out, f_out_pad):
    n = x.shape[0]
    a_bf = build_normalized_adjacency(edge_index, n).astype(jnp.bfloat16)
    x_bf = x.astype(jnp.bfloat16)

    # VMEM limit from actual buffer sizes (double-buffered) + headroom, not a blanket 32 MiB.
    buf_bytes = (a_bf.size * 2 + x_bf.size * 2 + w_slab.size * 4 + n * f_out_pad * 4)
    vmem_limit = int(2 * buf_bytes + (4 << 20))

    out_pad = pl.pallas_call(
        functools.partial(_fused_gcn2_kernel, f_in=f_in, hidden=hidden, f_out_pad=f_out_pad),
        out_shape=jax.ShapeDtypeStruct((n, f_out_pad), jnp.float32),
        grid_spec=pltpu.PrefetchScalarGridSpec(
            num_scalar_prefetch=0,
            grid=(1,),  # whole graph in one step; everything fits VMEM at this size
            in_specs=[
                pl.BlockSpec((n, n), lambda i: (0, 0)),          # A_hat
                pl.BlockSpec((n, f_in), lambda i: (0, 0)),       # X
                pl.BlockSpec(w_slab.shape, lambda i: (0, 0)),    # packed weight slab
            ],
            out_specs=pl.BlockSpec((n, f_out_pad), lambda i: (0, 0)),
        ),
        compiler_params=pltpu.CompilerParams(
            dimension_semantics=("arbitrary",),
            vmem_limit_bytes=vmem_limit,
        ),
    )(a_bf, x_bf, w_slab)

    return out_pad[:, :f_out]


def make_imbalanced_gcn_forward(params):
    """Returns (jitted forward(slab, x, edge_index), packed weight slab)."""
    slab, dims = pack_params(params)
    forward = jax.jit(functools.partial(_forward_impl, **dims))
    return forward, slab


# ------------------------------ glue (plain JAX, runs inside jit) -------------
def build_normalized_adjacency(edge_index, num_nodes):
    """Dense D^{-1/2}(A+I)D^{-1/2}; A[dst, src] accumulates duplicate edges (PyG parity) and
    every node gets exactly one weight-1 self loop (add_remaining_self_loops).
    Built with a one-hot matmul (MXU) instead of a serialized XLA scatter-add."""
    src, dst = edge_index[0], edge_index[1]
    non_self = (src != dst).astype(jnp.float32)
    dst_oh = jax.nn.one_hot(dst, num_nodes, dtype=jnp.float32)    # (E, N)
    src_oh = jax.nn.one_hot(src, num_nodes, dtype=jnp.float32)    # (E, N)
    a = jnp.matmul(dst_oh.T, non_self[:, None] * src_oh,
                   precision=jax.lax.Precision.HIGHEST)           # (N, N) exact small-int counts
    a = a + jnp.eye(num_nodes, dtype=jnp.float32)                 # one self loop per node, weight 1
    deg = jnp.sum(a, axis=1)                                      # in-degree (incl. self loop)
    d_inv_sqrt = jnp.where(deg > 0, jax.lax.rsqrt(deg), 0.0)
    return d_inv_sqrt[:, None] * a * d_inv_sqrt[None, :]


def glorot(key, shape):
    fan_in, fan_out = shape
    limit = jnp.sqrt(6.0 / (fan_in + fan_out))
    return jax.random.uniform(key, shape, jnp.float32, -limit, limit)


def _bf16_roundtrip(v):
    return v.astype(jnp.bfloat16).astype(jnp.float32)


def reference_forward(params, x, edge_index):
    """Pure-JAX reference with the same bf16 operand quantization as the kernel."""
    n = x.shape[0]
    a = _bf16_roundtrip(build_normalized_adjacency(edge_index, n))
    xb = _bf16_roundtrip(x)
    w1 = _bf16_roundtrip(params["w1"])
    w2 = _bf16_roundtrip(params["w2"])
    ax = a @ xb
    h = jnp.maximum(_bf16_roundtrip(ax) @ w1 + params["b1"], 0.0)
    ah = a @ _bf16_roundtrip(h)
    return _bf16_roundtrip(ah) @ w2 + params["b2"]


# ---------------------------------- main -------------------------------------
if __name__ == "__main__":
    key = jax.random.PRNGKey(0)
    k_x, k_e, k_w1, k_w2 = jax.random.split(key, 4)

    num_nodes = 64
    in_channels = 16
    hidden_channels = 32
    out_channels = 4
    num_edges = 128

    x = jax.random.normal(k_x, (num_nodes, in_channels), jnp.float32)
    edge_index = jax.random.randint(k_e, (2, num_edges), 0, num_nodes, jnp.int32)

    params = {
        "w1": glorot(k_w1, (in_channels, hidden_channels)),
        "b1": jnp.zeros((hidden_channels,), jnp.float32),
        "w2": glorot(k_w2, (hidden_channels, out_channels)),
        "b2": jnp.zeros((out_channels,), jnp.float32),
    }

    # One-time param packing + jitted forward; per-call path is a single XLA executable.
    forward, w_slab = make_imbalanced_gcn_forward(params)

    out = forward(w_slab, x, edge_index)
    jax.block_until_ready(out)

    ref = reference_forward(params, x, edge_index)
    assert out.shape == (num_nodes, out_channels)
    assert jnp.allclose(out, ref, atol=2e-2, rtol=2e-2)

    print("KERNEL_OK")
</pallas_src>

<mosaic_0001>
module attributes {stable_mosaic.version = 11 : i64} {
  func.func @_fused_gcn2_kernel(%arg0: i32, %arg1: memref<64x64xbf16, #tpu.memory_space<vmem>>, %arg2: memref<64x16xbf16, #tpu.memory_space<vmem>>, %arg3: memref<56x128xf32, #tpu.memory_space<vmem>>, %arg4: memref<64x128xf32, #tpu.memory_space<vmem>>) attributes {dimension_semantics = [#tpu.dimension_semantics<arbitrary>], iteration_bounds = array<i64: 1>, scalar_prefetch = 0 : i64, scratch_operands = 0 : i64, tpu.core_type = #tpu.core_type<tc>, window_params = [{pipeline_mode = #tpu.pipeline_mode<synchronous>, transform_indices = @transform_0, window_bounds = array<i64: 64, 64>}, {pipeline_mode = #tpu.pipeline_mode<synchronous>, transform_indices = @transform_1, window_bounds = array<i64: 64, 16>}, {pipeline_mode = #tpu.pipeline_mode<synchronous>, transform_indices = @transform_2, window_bounds = array<i64: 56, 128>}, {pipeline_mode = #tpu.pipeline_mode<synchronous>, transform_indices = @transform_3, window_bounds = array<i64: 64, 128>}]} {
    %c0 = arith.constant 0 : index
    %c0_0 = arith.constant 0 : index
    %0 = vector.load %arg1[%c0, %c0_0] : memref<64x64xbf16, #tpu.memory_space<vmem>>, vector<64x64xbf16>
    %c0_1 = arith.constant 0 : index
    %c0_2 = arith.constant 0 : index
    %1 = vector.load %arg3[%c0_1, %c0_2] : memref<56x128xf32, #tpu.memory_space<vmem>>, vector<56x128xf32>
    %2 = vector.extract_strided_slice %1 {offsets = [0, 0], sizes = [16, 32], strides = [1, 1]} : vector<56x128xf32> to vector<16x32xf32>
    %3 = arith.truncf %2 : vector<16x32xf32> to vector<16x32xbf16>
    %4 = vector.extract_strided_slice %1 {offsets = [16, 0], sizes = [1, 32], strides = [1, 1]} : vector<56x128xf32> to vector<1x32xf32>
    %5 = vector.extract_strided_slice %1 {offsets = [17, 0], sizes = [32, 128], strides = [1, 1]} : vector<56x128xf32> to vector<32x128xf32>
    %6 = arith.truncf %5 : vector<32x128xf32> to vector<32x128xbf16>
    %7 = vector.extract_strided_slice %1 {offsets = [49, 0], sizes = [1, 128], strides = [1, 1]} : vector<56x128xf32> to vector<1x128xf32>
    %c0_3 = arith.constant 0 : index
    %c0_4 = arith.constant 0 : index
    %8 = vector.load %arg2[%c0_3, %c0_4] : memref<64x16xbf16, #tpu.memory_space<vmem>>, vector<64x16xbf16>
    %cst = arith.constant dense<0.000000e+00> : vector<64x16xf32>
    %9 = tpu.matmul %0, %8, %cst {dimension_numbers = #tpu.dot_dimension_numbers<[1], [0], [0], [1], [0, 0, 1, 1], [], []>} : vector<64x64xbf16>, vector<64x16xbf16>, vector<64x16xf32> -> vector<64x16xf32>
    %10 = arith.truncf %9 : vector<64x16xf32> to vector<64x16xbf16>
    %cst_5 = arith.constant dense<0.000000e+00> : vector<64x32xf32>
    %11 = tpu.matmul %10, %3, %cst_5 {dimension_numbers = #tpu.dot_dimension_numbers<[1], [0], [0], [1], [0, 0, 1, 1], [], []>} : vector<64x16xbf16>, vector<16x32xbf16>, vector<64x32xf32> -> vector<64x32xf32>
    %12 = vector.broadcast %4 : vector<1x32xf32> to vector<64x32xf32>
    %13 = arith.addf %11, %12 : vector<64x32xf32>
    %cst_6 = arith.constant 0.000000e+00 : f32
    %14 = vector.broadcast %cst_6 : f32 to vector<64x32xf32>
    %15 = arith.maximumf %13, %14 : vector<64x32xf32>
    %16 = arith.truncf %15 : vector<64x32xf32> to vector<64x32xbf16>
    %cst_7 = arith.constant dense<0.000000e+00> : vector<64x32xf32>
    %17 = tpu.matmul %0, %16, %cst_7 {dimension_numbers = #tpu.dot_dimension_numbers<[1], [0], [0], [1], [0, 0, 1, 1], [], []>} : vector<64x64xbf16>, vector<64x32xbf16>, vector<64x32xf32> -> vector<64x32xf32>
    %18 = arith.truncf %17 : vector<64x32xf32> to vector<64x32xbf16>
    %cst_8 = arith.constant dense<0.000000e+00> : vector<64x128xf32>
    %19 = tpu.matmul %18, %6, %cst_8 {dimension_numbers = #tpu.dot_dimension_numbers<[1], [0], [0], [1], [0, 0, 1, 1], [], []>} : vector<64x32xbf16>, vector<32x128xbf16>, vector<64x128xf32> -> vector<64x128xf32>
    %20 = vector.broadcast %7 : vector<1x128xf32> to vector<64x128xf32>
    %21 = arith.addf %19, %20 : vector<64x128xf32>
    %c0_9 = arith.constant 0 : index
    %c0_10 = arith.constant 0 : index
    %22 = vector.load %arg4[%c0_9, %c0_10] : memref<64x128xf32, #tpu.memory_space<vmem>>, vector<64x128xf32>
    tpu.vector_store %arg4[%c0_9, %c0_10], %21 {strides = array<i32>} : memref<64x128xf32, #tpu.memory_space<vmem>>, vector<64x128xf32>,
    return
  }
  func.func @transform_0(%arg0: i32) -> (i32, i32) {
    %c0_i32 = arith.constant 0 : i32
    %c0_i32_0 = arith.constant 0 : i32
    %c0_i32_1 = arith.constant 0 : i32
    return %c0_i32, %c0_i32_0 : i32, i32
  }
  func.func @transform_1(%arg0: i32) -> (i32, i32) {
    %c0_i32 = arith.constant 0 : i32
    %c0_i32_0 = arith.constant 0 : i32
    %c0_i32_1 = arith.constant 0 : i32
    return %c0_i32, %c0_i32_0 : i32, i32
  }
  func.func @transform_2(%arg0: i32) -> (i32, i32) {
    %c0_i32 = arith.constant 0 : i32
    %c0_i32_0 = arith.constant 0 : i32
    %c0_i32_1 = arith.constant 0 : i32
    return %c0_i32, %c0_i32_0 : i32, i32
  }
  func.func @transform_3(%arg0: i32) -> (i32, i32) {
    %c0_i32 = arith.constant 0 : i32
    %c0_i32_0 = arith.constant 0 : i32
    %c0_i32_1 = arith.constant 0 : i32
    return %c0_i32, %c0_i32_0 : i32, i32
  }
}

</mosaic_0001>

<bundles_post_ra>
// kernel: _forward_impl.1
= control target key start
LH: loop header
LB: loop body
LE: loop exit
PB: predicated region body
PF: predicated region fallthrough
CT: control target
= control target key end

     0   :  { %vm86_vm0 = vcmask 523264   ;;  %vm172_vm1 = vcmask 130048   ;;  %v168_v23 = vlaneseq  ;;  %vm335_vm2 = vsmask.f32 7424  ;;  %s678_s1 = inlined_call_operand.vmem [shape: bf16[64,16], index: 1, kind: input, shape index: {}]   ;;  %s679_s0 = inlined_call_operand.vmem [shape: bf16[64,64], index: 0, kind: input, shape index: {}]   ;;  %s680_s2 = inlined_call_operand.vmem [shape: f32[56,128], index: 2, kind: input, shape index: {}]   ;;  %s681_s3 = inlined_call_operand.vmem [shape: f32[64,128], index: 3, kind: output, shape index: {}]  }
   0x1   :  { %v557_v0 = vld [vmem:[%s678_s1 + $0x18] sm:$0xff]   ;;  %v558_v1 = vld [vmem:[%s678_s1 + $0x10] sm:$0xff]   ;;  %v559_v2 = vld [vmem:[%s678_s1 + $0x8] sm:$0xff]   ;;  %vm358_vm3 = vcmask 261120  }
   0x2   :  { %499 = vmatprep.subr.bf16.mxu0 %v557_v0  ;;  %v561_v3 = vld [vmem:[%s679_s0] sm:$0xff]   ;;  %v604_v5 = vld [vmem:[%s679_s0 + $0x8] sm:$0xff]   ;;  %v609_v6 = vld [vmem:[%s679_s0 + $0x10] sm:$0xff]   ;;  %v629_v25 = vshrl.u32 %v168_v23, 7 }
   0x3   :  { %500 = vmatpush3.bf16.msra.mxu0 %v557_v0  ;;  %507 = vmatprep.mubr.msk.bf16.mxu0 %vm86_vm0, %v561_v3  ;;  %v560_v4 = vld [vmem:[%s678_s1] sm:$0xff]   ;;  %v618_v7 = vld [vmem:[%s679_s0 + $0x18] sm:$0xff]   ;;  %v24_v9 = vld [vmem:[%s680_s2 + $0x8] sm:$0xff] }
   0x4   :  { %501 = vmatprep.subr.bf16.mxu0 %v558_v1  ;;  %v23_v8 = vld [vmem:[%s680_s2] sm:$0xff]  ;;  %v170_v28 = vsub.s32 0, %v629_v25  ;;  %v25_v29 = vld [vmem:[%s680_s2 + $0x10] sm:$0xff]  ;;  %v28_v57 = vld [vmem:[%s680_s2 + $0x28] sm:$0xff]  ;;  %v333_v23 = vsub.s32 1, %v629_v25 }
   0x5   :  { %v30_v10 = vpack.c.bf16 %v24_v9, %v23_v8  ;;  %v27_v56 = vld [vmem:[%s680_s2 + $0x20] sm:$0xff]  ;;  %v29_v59 = vld [vmem:[%s680_s2 + $0x30] sm:$0xff]  ;;  %v26_v62 = vld [vmem:[%s680_s2 + $0x18] sm:$0xff] }
   0x6   :  { %v171_v32 = vrot.slane %v25_v29, %v170_v28  ;;  %v32_v58 = vpack.c.bf16 %v28_v57, %v27_v56  ;;  %v33_v60 = vpack.c.bf16 %v29_v59, %v29_v59 }
   0x7   :  { %502 = vmatpush3.bf16.msra.mxu0 %v558_v1  ;;  %515 = vmatprep.subr.bf16.mxu1 %v30_v10 }
   0x8   :  { %503 = vmatprep.subr.bf16.mxu0 %v559_v2  ;;  %516 = vmatpush3.bf16.msra.mxu1 %v30_v10  ;;  %v344_v61 = vshll.u32 %v32_v58, 16  ;;  %v348_v0 = vshrl.u32 %v32_v58, 16  ;;  %v352_v1 = vshll.u32 %v33_v60, 16 }
   0xa   :  { %v346_v63 = vrot.slane %v344_v61, 1 }
   0xb   :  { %504 = vmatpush3.bf16.msra.mxu0 %v559_v2  ;;  %v31_v2 = vpack.c.bf16 %v26_v62, %v25_v29 }
   0xc   :  { %505 = vmatprep.subr.bf16.mxu0 %v560_v4 }
   0xf   :  { %506 = vmatpush3.bf16.msra.mxu0 %v560_v4  ;;  %v354_v4 = vrot.slane %v352_v1, 1 }
  0x12   :  { %508 = vmatmul.mubr.msk.bf16.vlgmr.msra.gmra.mxu0 %vm86_vm0, %v604_v5 }
  0x13   :  { %511 = vmatprep.mubr.msk.bf16.mxu0 %vm86_vm0, %v609_v6 }
  0x1a   :  { %512 = vmatmul.mubr.msk.bf16.gmra.mxu0 %vm86_vm0, %v618_v7 }
  0xd2   :  { %v509_v11 = vpop.f32.mrf.mxu0 }
  0xd4   :  { %v133_v12 = vpop.f32.mrf.mxu0 }
  0xd6   :  { %v510_v13 = vpop.f32.mrf.mxu0 }
  0xd7   :  { %v165_v16 = vpack.c.bf16 %v510_v13, %v509_v11 }
  0xd8   :  { %v136_v14 = vpop.f32.mrf.mxu0 }
  0xd9   :  { %v164_v15 = vpack.c.bf16 %v136_v14, %v133_v12 }
  0xda   :  { %v513_v17 = vpop.f32.mrf.mxu0 }
  0xdb   :  { %517 = vmatprep.mubr.msk.bf16.mxu1 %vm172_vm1, %v164_v15 }
  0xdc   :  { %v149_v18 = vpop.f32.mrf.mxu0  ;;  %518 = vmatmul.mubr.msk.bf16.vlgmr.msra.gmra.mxu1 %vm172_vm1, %v165_v16 }
  0xde   :  { %v514_v19 = vpop.f32.mrf.mxu0 }
  0xdf   :  { %v167_v22 = vpack.c.bf16 %v514_v19, %v513_v17 }
  0xe0   :  { %v152_v20 = vpop.f32.mrf.mxu0 }
  0xe1   :  { %v166_v21 = vpack.c.bf16 %v152_v20, %v149_v18 }
  0xe3   :  { %521 = vmatprep.mubr.msk.bf16.mxu1 %vm172_vm1, %v166_v21 }
  0xe4   :  { %522 = vmatmul.mubr.msk.bf16.gmra.mxu1 %vm172_vm1, %v167_v22 }
  0xe5   :  { %533 = vmatprep.mubr.msk.bf16.mxu1 %vm86_vm0, %v561_v3  ;;  %v350_v3 = vor.u32 %v348_v0, %v346_v63 }
 0x19c   :  { %v519_v24 = vpop.f32.mrf.mxu1 }
 0x19d   :  { %v228_v43 = vadd.f32 %v519_v24, %v171_v32  ;;  %v334_v24 = vrot.slane %v29_v59, %v333_v23 }
 0x19e   :  { %v219_v26 = vpop.f32.mrf.mxu1 }
 0x19f   :  { %v252_v50 = vmax.f32 %v228_v43, 0.0  ;;  %v220_v51 = vadd.f32 %v219_v26, %v171_v32 }
 0x1a0   :  { %v520_v27 = vpop.f32.mrf.mxu1 }
 0x1a1   :  { %v231_v39 = vadd.f32 %v520_v27, %v171_v32  ;;  %v250_v54 = vmax.f32 %v220_v51, 0.0 }
 0x1a2   :  { %v222_v30 = vpop.f32.mrf.mxu1 }
 0x1a3   :  { %v253_v47 = vmax.f32 %v231_v39, 0.0  ;;  %v223_v48 = vadd.f32 %v222_v30, %v171_v32 }
 0x1a4   :  { %v523_v31 = vpop.f32.mrf.mxu1 }
 0x1a5   :  { %v244_v34 = vadd.f32 %v523_v31, %v171_v32  ;;  %v259_v52 = vpack.c.bf16 %v253_v47, %v252_v50  ;;  %v251_v53 = vmax.f32 %v223_v48, 0.0 }
 0x1a6   :  { %v235_v33 = vpop.f32.mrf.mxu1 }
 0x1a7   :  { %v236_v36 = vadd.f32 %v235_v33, %v171_v32  ;;  %v256_v40 = vmax.f32 %v244_v34, 0.0  ;;  %v258_v55 = vpack.c.bf16 %v251_v53, %v250_v54 }
 0x1a8   :  { %v524_v35 = vpop.f32.mrf.mxu1 }
 0x1a9   :  { %v247_v37 = vadd.f32 %v524_v35, %v171_v32  ;;  %v254_v44 = vmax.f32 %v236_v36, 0.0 }
 0x1aa   :  { %v238_v38 = vpop.f32.mrf.mxu1 }
 0x1ab   :  { %v257_v41 = vmax.f32 %v247_v37, 0.0  ;;  %v239_v42 = vadd.f32 %v238_v38, %v171_v32 }
 0x1ad   :  { %v261_v45 = vpack.c.bf16 %v257_v41, %v256_v40  ;;  %v255_v46 = vmax.f32 %v239_v42, 0.0 }
 0x1af   :  { %v260_v49 = vpack.c.bf16 %v255_v46, %v254_v44  ;;  %525 = vmatprep.subr.bf16.mxu1 %v261_v45 }
 0x1b0   :  { %526 = vmatpush3.bf16.msra.mxu1 %v261_v45 }
 0x1b1   :  { %527 = vmatprep.subr.bf16.mxu1 %v260_v49 }
 0x1b4   :  { %528 = vmatpush3.bf16.msra.mxu1 %v260_v49 }
 0x1b5   :  { %529 = vmatprep.subr.bf16.mxu1 %v259_v52 }
 0x1b8   :  { %530 = vmatpush3.bf16.msra.mxu1 %v259_v52 }
 0x1b9   :  { %531 = vmatprep.subr.bf16.mxu1 %v258_v55 }
 0x1bc   :  { %532 = vmatpush3.bf16.msra.mxu1 %v258_v55 }
 0x1bf   :  { %534 = vmatmul.mubr.msk.bf16.vlgmr.msra.gmra.mxu1 %vm86_vm0, %v604_v5  ;;  %v339_v5 = vshll.u32 %v31_v2, 16 }
 0x1c0   :  { %537 = vmatprep.mubr.msk.bf16.mxu1 %vm86_vm0, %v609_v6  ;;  %v355_v6 = vsel %vm335_vm2, %v350_v3, %v354_v4 }
 0x1c1   :  { %v341_v8 = vrot.slane %v339_v5, 1  ;;  %541 = vmatprep.subr.bf16.mxu0 %v355_v6  ;;  %553 = vmatprep.subr.bf16.mxu1 %v355_v6 }
 0x1c2   :  { %542 = vmatpush3.bf16.msra.mxu0 %v355_v6  ;;  %555 = vmatpush3.bf16.msra.mxu1 %v355_v6 }
 0x1c7   :  { %538 = vmatmul.mubr.msk.bf16.gmra.mxu1 %vm86_vm0, %v618_v7  ;;  %v337_v7 = vshrl.u32 %v31_v2, 16 }
 0x1c9   :  { %v342_v9 = vor.u32 %v341_v8, %v337_v7 }
 0x1cb   :  { %v347_v10 = vsel %vm335_vm2, %v342_v9, %v346_v63 }
 0x1cc   :  { %543 = vmatprep.subr.bf16.mxu0 %v347_v10  ;;  %554 = vmatprep.subr.bf16.mxu1 %v347_v10 }
 0x1cd   :  { %544 = vmatpush3.bf16.msra.mxu0 %v347_v10  ;;  %556 = vmatpush3.bf16.msra.mxu1 %v347_v10 }
 0x27f   :  { %v535_v11 = vpop.f32.mrf.mxu1 }
 0x281   :  { %v296_v12 = vpop.f32.mrf.mxu1 }
 0x283   :  { %v536_v13 = vpop.f32.mrf.mxu1 }
 0x284   :  { %v328_v16 = vpack.c.bf16 %v536_v13, %v535_v11 }
 0x285   :  { %v299_v14 = vpop.f32.mrf.mxu1 }
 0x286   :  { %v327_v15 = vpack.c.bf16 %v299_v14, %v296_v12 }
 0x287   :  { %v539_v17 = vpop.f32.mrf.mxu1 }
 0x288   :  { %545 = vmatprep.mubr.msk.bf16.mxu0 %vm358_vm3, %v327_v15 }
 0x289   :  { %v312_v18 = vpop.f32.mrf.mxu1  ;;  %546 = vmatmul.mubr.msk.bf16.vlgmr.msra.gmra.mxu0 %vm358_vm3, %v328_v16 }
 0x28b   :  { %v540_v19 = vpop.f32.mrf.mxu1 }
 0x28c   :  { %v330_v22 = vpack.c.bf16 %v540_v19, %v539_v17 }
 0x28d   :  { %v315_v20 = vpop.f32.mrf.mxu1 }
 0x28e   :  { %v329_v21 = vpack.c.bf16 %v315_v20, %v312_v18 }
 0x290   :  { %549 = vmatprep.mubr.msk.bf16.mxu1 %vm358_vm3, %v329_v21 }
 0x291   :  { %550 = vmatmul.mubr.msk.bf16.vlgmr.msra.gmra.mxu1 %vm358_vm3, %v330_v22 }
 0x349   :  { %v547_v26 = vpop.f32.mrf.mxu0 }
 0x34a   :  { %v414_v27 = vadd.f32 %v547_v26, %v334_v24 }
 0x34b   :  { %v405_v28 = vpop.f32.mrf.mxu0 }
 0x34c   :  { %438 = vst [vmem:[%s681_s3 + $0x10] sm:$0xff] %v414_v27  ;;  %v406_v29 = vadd.f32 %v405_v28, %v334_v24 }
 0x34d   :  { %v548_v30 = vpop.f32.mrf.mxu0 }
 0x34e   :  { %436 = vst [vmem:[%s681_s3] sm:$0xff] %v406_v29  ;;  %v417_v31 = vadd.f32 %v548_v30, %v334_v24 }
 0x34f   :  { %v408_v32 = vpop.f32.mrf.mxu0 }
 0x350   :  { %439 = vst [vmem:[%s681_s3 + $0x18] sm:$0xff] %v417_v31  ;;  %v409_v25 = vadd.f32 %v408_v32, %v334_v24 }
 0x351   :  { %v551_v33 = vpop.f32.mrf.mxu1 }
 0x352   :  { %437 = vst [vmem:[%s681_s3 + $0x8] sm:$0xff] %v409_v25  ;;  %v430_v34 = vadd.f32 %v551_v33, %v334_v24 }
 0x353   :  { %v421_v35 = vpop.f32.mrf.mxu1 }
 0x354   :  { %442 = vst [vmem:[%s681_s3 + $0x30] sm:$0xff] %v430_v34  ;;  %v422_v36 = vadd.f32 %v421_v35, %v334_v24 }
 0x355   :  { %v552_v37 = vpop.f32.mrf.mxu1 }
 0x356   :  { %440 = vst [vmem:[%s681_s3 + $0x20] sm:$0xff] %v422_v36  ;;  %v433_v38 = vadd.f32 %v552_v37, %v334_v24 }
 0x357   :  { %v424_v39 = vpop.f32.mrf.mxu1 }
 0x358   :  { %443 = vst [vmem:[%s681_s3 + $0x38] sm:$0xff] %v433_v38  ;;  %v425_v40 = vadd.f32 %v424_v39, %v334_v24 }
 0x35a   :  { %441 = vst [vmem:[%s681_s3 + $0x28] sm:$0xff] %v425_v40 }

</bundles_post_ra>
